<compile_context>
chip_gen: v5e
topology: v5e:2x2
jax: 0.10.0
libtpu: 0.0.40
codegen_flags: <defaults>
</compile_context>

<pallas_src>
import jax
import jax.numpy as jnp
from jax.experimental import pallas as pl
from jax.experimental.pallas import tpu as pltpu

_LANES = 128


def _relu_mask_kernel(x_ref, y_ref, mask_ref):
    x = x_ref[...]
    mask = (x > 0).astype(x.dtype)
    y_ref[...] = x * mask
    mask_ref[...] = mask


def _sublane_multiple(dtype) -> int:
    # (8, 128) tile for 32-bit, (16, 128) for bf16, (32, 128) for int8/fp8.
    itemsize = jnp.dtype(dtype).itemsize
    return max(8, 32 // max(itemsize, 1))


def _round_up(x: int, m: int) -> int:
    return ((x + m - 1) // m) * m


def relu_flow_forward(x, *, tile_rows: int = 8192, donate_input: bool = False):
    """Pallas equivalent of ReLU.forward: returns (x * mask, mask)."""
    orig_shape = x.shape
    total = x.size
    dtype = x.dtype

    sub = _sublane_multiple(dtype)
    chunk = sub * _LANES

    # Ragged / tiny shapes: a full-array jnp.pad plus two output slices can't
    # fuse into the opaque pallas_call (each is an extra full HBM pass), so the
    # XLA-fused expression (1 read + 2 writes, already at the HBM roofline) is
    # strictly better there. Aligned shapes take the Pallas streaming path.
    if total == 0 or total % chunk != 0:
        mask = (x > 0).astype(dtype)
        return x * mask, mask

    rows = total // _LANES
    x2d = x.reshape(rows, _LANES)

    # Lane-dense (tr, 128) blocks. Big tiles amortize the ~0.35us/step
    # pipeline overhead; force >= 2 grid steps so the "parallel" axis can be
    # sharded across v7x's two TensorCores.
    tr = min(int(tile_rows), rows)
    tr = max((tr // sub) * sub, sub)
    if pl.cdiv(rows, tr) < 2 and rows > sub:
        tr = _round_up(pl.cdiv(rows, 2), sub)
    tr = min(tr, rows)
    grid = (pl.cdiv(rows, tr),)

    # VMEM budget: 3 streams (1 in + 2 out) x 2 buffers x block bytes.
    # Raise the scoped-VMEM limit explicitly (v5e default is only 16 MiB);
    # cap at 48 MiB to stay under v7x's 64 MiB physical VMEM.
    block_bytes = tr * _LANES * jnp.dtype(dtype).itemsize
    vmem_limit = int(min(48 << 20, max(8 * block_bytes, 16 << 20)))

    spec = pl.BlockSpec((tr, _LANES), lambda i: (i, 0))

    call_kwargs = {}
    if donate_input:
        # y reuses x's HBM buffer when the caller donates x (cuts peak HBM
        # footprint by one tensor; bandwidth is unchanged).
        call_kwargs["input_output_aliases"] = {0: 0}

    y2d, mask2d = pl.pallas_call(
        _relu_mask_kernel,
        out_shape=(
            jax.ShapeDtypeStruct((rows, _LANES), dtype),
            jax.ShapeDtypeStruct((rows, _LANES), dtype),
        ),
        grid_spec=pltpu.PrefetchScalarGridSpec(
            num_scalar_prefetch=0,
            grid=grid,
            in_specs=[spec],
            out_specs=(spec, spec),
        ),
        compiler_params=pltpu.CompilerParams(
            dimension_semantics=("parallel",),
            vmem_limit_bytes=vmem_limit,
        ),
        **call_kwargs,
    )(x2d)

    return y2d.reshape(orig_shape), mask2d.reshape(orig_shape)


if __name__ == "__main__":
    key = jax.random.PRNGKey(0)

    # NCHW input, as the PyTorch flow module would receive (aligned path:
    # 2048 elements -> 2 grid steps of (8, 128)).
    x = jax.random.normal(key, (2, 4, 16, 16), dtype=jnp.float32)
    y, mask = relu_flow_forward(x)
    jax.block_until_ready((y, mask))

    ref_mask = (x > 0).astype(x.dtype)
    ref_y = x * ref_mask
    assert y.shape == x.shape and mask.shape == x.shape
    assert y.dtype == x.dtype and mask.dtype == x.dtype
    assert jnp.array_equal(y, ref_y)
    assert jnp.array_equal(mask, ref_mask)

    # Ragged (non-multiple-of-1024) shape goes through the fused-jnp fallback.
    x2 = jax.random.normal(jax.random.PRNGKey(1), (3, 5, 7, 11), dtype=jnp.float32)
    y2, mask2 = relu_flow_forward(x2)
    jax.block_until_ready((y2, mask2))
    ref_mask2 = (x2 > 0).astype(x2.dtype)
    assert jnp.array_equal(y2, x2 * ref_mask2)
    assert jnp.array_equal(mask2, ref_mask2)

    # Larger aligned shape exercises the multi-block streaming path.
    x3 = jax.random.normal(jax.random.PRNGKey(2), (4, 8, 32, 32), dtype=jnp.float32)
    y3, mask3 = relu_flow_forward(x3)
    jax.block_until_ready((y3, mask3))
    ref_mask3 = (x3 > 0).astype(x3.dtype)
    assert jnp.array_equal(y3, x3 * ref_mask3)
    assert jnp.array_equal(mask3, ref_mask3)

    print("KERNEL_OK")
</pallas_src>

<mosaic_0001>
module attributes {stable_mosaic.version = 11 : i64} {
  func.func @_relu_mask_kernel(%arg0: i32, %arg1: memref<8x128xf32, #tpu.memory_space<vmem>>, %arg2: memref<8x128xf32, #tpu.memory_space<vmem>>, %arg3: memref<8x128xf32, #tpu.memory_space<vmem>>) attributes {dimension_semantics = [#tpu.dimension_semantics<parallel>], iteration_bounds = array<i64: 2>, scalar_prefetch = 0 : i64, scratch_operands = 0 : i64, tpu.core_type = #tpu.core_type<tc>, window_params = [{transform_indices = @transform_0, window_bounds = array<i64: 8, 128>}, {transform_indices = @transform_1, window_bounds = array<i64: 8, 128>}, {transform_indices = @transform_2, window_bounds = array<i64: 8, 128>}]} {
    %c0 = arith.constant 0 : index
    %c0_0 = arith.constant 0 : index
    %0 = vector.load %arg1[%c0, %c0_0] : memref<8x128xf32, #tpu.memory_space<vmem>>, vector<8x128xf32>
    %cst = arith.constant 0.000000e+00 : f32
    %1 = vector.broadcast %cst : f32 to vector<8x128xf32>
    %2 = arith.cmpf ogt, %0, %1 : vector<8x128xf32>
    %3 = arith.extui %2 : vector<8x128xi1> to vector<8x128xi32>
    %4 = arith.sitofp %3 : vector<8x128xi32> to vector<8x128xf32>
    %5 = arith.mulf %0, %4 : vector<8x128xf32>
    %c0_1 = arith.constant 0 : index
    %c0_2 = arith.constant 0 : index
    %6 = vector.load %arg2[%c0_1, %c0_2] : memref<8x128xf32, #tpu.memory_space<vmem>>, vector<8x128xf32>
    tpu.vector_store %arg2[%c0_1, %c0_2], %5 {strides = array<i32>} : memref<8x128xf32, #tpu.memory_space<vmem>>, vector<8x128xf32>,
    %c0_3 = arith.constant 0 : index
    %c0_4 = arith.constant 0 : index
    %7 = vector.load %arg3[%c0_3, %c0_4] : memref<8x128xf32, #tpu.memory_space<vmem>>, vector<8x128xf32>
    tpu.vector_store %arg3[%c0_3, %c0_4], %4 {strides = array<i32>} : memref<8x128xf32, #tpu.memory_space<vmem>>, vector<8x128xf32>,
    return
  }
  func.func @transform_0(%arg0: i32) -> (i32, i32) {
    %c0_i32 = arith.constant 0 : i32
    %c0_i32_0 = arith.constant 0 : i32
    return %arg0, %c0_i32 : i32, i32
  }
  func.func @transform_1(%arg0: i32) -> (i32, i32) {
    %c0_i32 = arith.constant 0 : i32
    %c0_i32_0 = arith.constant 0 : i32
    return %arg0, %c0_i32 : i32, i32
  }
  func.func @transform_2(%arg0: i32) -> (i32, i32) {
    %c0_i32 = arith.constant 0 : i32
    %c0_i32_0 = arith.constant 0 : i32
    return %arg0, %c0_i32 : i32, i32
  }
}

</mosaic_0001>

<bundles_post_ra>
// kernel: tpu_custom_call.1
= control target key start
LH: loop header
LB: loop body
LE: loop exit
PB: predicated region body
PF: predicated region fallthrough
CT: control target
= control target key end

     0   :  { %8 = vsyncpa [#allocation3], 0  ;;  %s693_s0 = inlined_call_operand.hbm [shape: f32[16,128], index: 0, kind: input, shape index: {}]   ;;  %s694_s1 = inlined_call_operand.hbm [shape: f32[16,128], index: 1, kind: output, shape index: {0}]   ;;  %s695_s2 = inlined_call_operand.hbm [shape: f32[16,128], index: 2, kind: output, shape index: {1}]  }
   0x1   :  { %10 = vsyncpa [#allocation3 + $0x1], 0 }
   0x2   :  { %11 = vsyncpa [#allocation4], 0 }
   0x3   :  { %13 = vsyncpa [#allocation4 + $0x1], 0 }
   0x4   :  { %14 = vsyncpa [#allocation7], 0 }
   0x5   :  { %16 = vsyncpa [#allocation7 + $0x1], 0  ;;  %s531_s9 = smov 0   ;;  %s533_s10 = smov 0  }
   0x6   :  { %s535_s11 = smov 0   ;;  %s537_s12 = smov 0  }
   0x7 LB: > { %s552_s13 = sadd.s32 4294967295, %s513_s12   ;;  %s317_s14 = sadd.s32 4294967294, %s513_s12   ;;  %s513_s12 = sphi %s537_s12, %s705_s12   ;;  %s509_s11 = sphi %s535_s11, %s704_s11   ;;  %s505_s10 = sphi %s533_s10, %s703_s10   ;;  %s501_s9 = sphi %s531_s9, %s702_s9  }
   0x8   : > { %s556_s15 = sadd.s32 1, %s513_s12   ;;  %s29_s16 = sadd.s32 1, %s509_s11 }
   0x9   : > { %s26_s17 = ssub.s32 %s513_s12, %s556_s15  ;;  %p36_p0 = scmp.ne.s32.totalorder %s509_s11, %s505_s10 }
   0xa   : > { %p27_p1 = scmp.eq.s32.totalorder %s26_s17, 0  ;;  %p37_p2 = scmp.eq.s32.totalorder %s513_s12, 0 }
   0xb   : > { %p42_p3 = scmp.ne.s32.totalorder %s505_s10, %s501_s9  ;;  %p43_p4 = scmp.eq.s32.totalorder %s552_s13, 0 }
   0xc   : > { %s568_s18 = scalar_select %p27_p1, %s509_s11, %s29_s16  }
   0xd   : > { %p570_p5 = por %p37_p2, %p36_p0  ;;  %p574_p6 = por %p43_p4, %p42_p3 }
   0xe   : > { %p66_p7 = scmp.eq.s32.totalorder %s552_s13, 1  ;;  %p72_p8 = scmp.eq.s32.totalorder %s317_s14, 1 }
   0xf   : > { %p350_p10 = scmp.lt.s32.totalorder %s513_s12, 2  ;;  %s118_s23 = sand.u32 1, %s509_s11  }
  0x10   : > { %p581_p11 = por %p66_p7, %p36_p0  ;;  %p585_p12 = por %p72_p8, %p42_p3 }
  0x11   : > { %s321_s24 = sshll.u32 %s513_s12, 3  ;;  %s320_s25 = sshll.u32 %s118_s23, 3 }
  0x12   : > { %s126_s28 = scalar_lea.hbm %s693_s0, %s321_s24  ;;  %s122_s30 = scalar_lea.vmem [#allocation2], %s320_s25 }
  0x13   : > { %s128_s29 = sshll.u32 %s126_s28, 4  ;;  %s130_s3 = sshll.u32 %s122_s30, 4  ;;  %s129_s29 = int_to_ptr.hbm [resolvable:$true] %s128_s29  ;;  %s131_s3 = int_to_ptr.vmem [resolvable:$true] %s130_s3 }
  0x14   : > { %p596_p13 = pnand %p350_p10, %p570_p5  ;;  %p322_p0 = scmp.ge.s32.totalorder %s513_s12, 1 }
  0x15   : > { %p135_p1 = scmp.lt.s32.totalorder %s513_s12, 3  ;;  %s119_s5 = scalar_lea.sflag [#allocation3], %s118_s23 }
  0x16   : > { %s385_s6 = sshra.s32 %s129_s29, 4  ;;  %p389_p3 = pneg %p596_p13  ;;  %s386_s6 = int_to_ptr.hbm [resolvable:$true] %s385_s6 }
  0x17   : > { %s387_s7 = scalar_lea.hbm %s386_s6, 8  ;;  %s392_s16 = scalar_lea.hbm %s693_s0, 16 }
  0x18   : > { %p388_p2 = scmp.ne.s32.totalorder %s386_s6, %s387_s7  ;;  %p393_p5 = scmp.lt.s32.totalorder %s386_s6, %s693_s0 }
  0x19   : > { %p394_p8 = scmp.lt.s32.totalorder %s392_s16, %s387_s7 }
  0x1a   : > { %p390_p4 = pnand %p389_p3, %p388_p2 }
  0x1b   : > { %p395_p10 = por %p394_p8, %p393_p5 }
  0x1c   : > { %p391_p7 = pneg %p390_p4 }
  0x1e   : > { %p396_p9 = pnand %p395_p10, %p391_p7 }
  0x20   : > { %399 = shalt.err (!%p396_p9)
}
  0x21   : > { %342 = dma.hbm_to_vmem [thread:$0]  (!%p596_p13), %s129_s29, 128, %s131_s3, %s119_s5  }
  0x22   : > { %p136_p2 = pnand %p322_p0, %p135_p1 }
  0x23   : > { %s617_s23 = sand.u32 (!%p136_p2), 1, %s505_s10  }
  0x24   : > { %139 = sbr.rel (%p136_p2) target bundleno = 71 (0x47), region = 24  ;;  %s620_s24 = sshll.u32 (!%p136_p2), %s617_s23, 3 }
  0x25   : > { %s142_s25 = scalar_lea.sflag (!%p136_p2), [#allocation3], %s617_s23  ;;  %s145_s26 = scalar_lea.vmem (!%p136_p2), [#allocation2], %s620_s24 }
  0x29   : > { %488 = dma.done.wait (%p574_p6), %s142_s25, 128  }
  0x2a   : > { %490 = vsyncadd (%p574_p6), %s142_s25, 4294967168  ;;  %s329_s27 = sshll.u32 %s552_s13, 3  ;;  %s171_s28 = scalar_lea.vmem [#allocation6], %s620_s24  ;;  %v172_v0 = vld [vmem:[%s145_s26] sm:$0xff]  ;;  %v515_v1 = vmov 0.0  }
  0x2b   : > { %s630_s29 = sshll.u32 %s171_s28, 4  ;;  %s195_s4 = scalar_lea.hbm %s694_s1, %s329_s27  ;;  %vm173_vm0 = vcmp.gt.f32.partialorder %v172_v0, 0.0  ;;  %s212_s29 = int_to_ptr.vmem [resolvable:$true] %s630_s29 }
  0x2c   : > { %s209_s7 = scalar_lea.hbm %s695_s2, %s329_s27  ;;  %s164_s20 = scalar_lea.vmem [#allocation5], %s620_s24  ;;  %v326_v2 = vsel %vm173_vm0, 1.0, %v515_v1 }
  0x2d   : > { %s641_s8 = sshll.u32 %s164_s20, 4  ;;  %s213_s14 = sshll.u32 %s209_s7, 4  ;;  %v176_v3 = vmul.f32 %v326_v2, %v172_v0  ;;  %178 = vst [vmem:[%s171_s28] sm:$0xff] %v326_v2  ;;  %s214_s14 = int_to_ptr.hbm [resolvable:$true] %s213_s14  ;;  %s198_s8 = int_to_ptr.vmem [resolvable:$true] %s641_s8 }
  0x2e   : > { %s199_s13 = sshll.u32 %s195_s4, 4  ;;  %s185_s16 = scalar_lea.sflag [#allocation7], %s617_s23  ;;  %s645_s13 = int_to_ptr.hbm [resolvable:$true] %s199_s13 }
  0x2f   : > { %s429_s17 = sshra.s32 %s214_s14, 4  ;;  %s435_s27 = scalar_lea.hbm %s695_s2, 16  ;;  %s430_s17 = int_to_ptr.hbm [resolvable:$true] %s429_s17 }
  0x30   : > { %s431_s19 = scalar_lea.hbm %s430_s17, 8  ;;  %p436_p0 = scmp.lt.s32.totalorder %s430_s17, %s695_s2 }
  0x31   : > { %p432_p6 = scmp.ne.s32.totalorder %s430_s17, %s431_s19  ;;  %p437_p1 = scmp.lt.s32.totalorder %s435_s27, %s431_s19 }
  0x33   : > { %p433_p9 = pnand %p432_p6, %p581_p11  ;;  %p438_p3 = por %p437_p1, %p436_p0 }
  0x35   : > { %p434_p13 = pneg %p433_p9 }
  0x37   : > { %p439_p4 = pnand %p438_p3, %p434_p13 }
  0x39   : > { %442 = shalt.err (!%p439_p4)
}
  0x3a   : > { %336 = dma.vmem_to_hbm [thread:$0]  (%p581_p11), %s212_s29, 128, %s214_s14, %s185_s16   ;;  %177 = vst [vmem:[%s164_s20] sm:$0xff] %v176_v3 }
  0x3b   : > { %s180_s28 = scalar_lea.sflag [#allocation4], %s617_s23  ;;  %s457_s4 = sshra.s32 %s645_s13, 4  ;;  %s458_s4 = int_to_ptr.hbm [resolvable:$true] %s457_s4 }
  0x3c   : > { %s459_s5 = scalar_lea.hbm %s458_s4, 8  ;;  %s463_s17 = scalar_lea.hbm %s694_s1, 16 }
  0x3d   : > { %p460_p7 = scmp.ne.s32.totalorder %s458_s4, %s459_s5  ;;  %p464_p10 = scmp.lt.s32.totalorder %s458_s4, %s694_s1 }
  0x3e   : > { %p465_p2 = scmp.lt.s32.totalorder %s463_s17, %s459_s5 }
  0x3f   : > { %p461_p5 = pnand %p460_p7, %p581_p11 }
  0x40   : > { %p466_p6 = por %p465_p2, %p464_p10 }
  0x41   : > { %p462_p8 = pneg %p461_p5 }
  0x43   : > { %p467_p9 = pnand %p466_p6, %p462_p8 }
  0x45   : > { %470 = shalt.err (!%p467_p9)
}
  0x46   : > { %335 = dma.vmem_to_hbm [thread:$0]  (%p581_p11), %s198_s8, 128, %s645_s13, %s180_s28  }
  0x47 PF: > { %s225_s23 = sand.u32 1, %s501_s9   ;;  %p701_p13 = scmp.ge.s32.totalorder %s513_s12, 2 }
  0x48   : > { %s226_s24 = scalar_lea.sflag [#allocation4], %s225_s23 }
  0x49   : > { %p344_p0 = pnand %p701_p13, %p585_p12 }
  0x4b   : > { %p345_p1 = pneg %p344_p0 }
  0x4d   : > { %492 = dma.done.wait (%p345_p1), %s226_s24, 128  }
  0x4e   : > { %494 = vsyncadd (%p345_p1), %s226_s24, 4294967168  ;;  %s236_s29 = scalar_lea.sflag [#allocation7], %s225_s23 }
  0x4f   : > { %496 = dma.done.wait (%p345_p1), %s236_s29, 128  }
  0x50   : > { %498 = vsyncadd (%p345_p1), %s236_s29, 4294967168  ;;  %p19_p11 = scmp.ge.s32.totalorder %s556_s15, 4   ;;  %s702_s9 = smov %s505_s10 }
  0x51   : > { %s703_s10 = smov %s509_s11  ;;  %s704_s11 = smov %s568_s18 }
  0x52   : > { %s705_s12 = smov %s556_s15  ;;  %21 = sbr.rel (!%p19_p11) target bundleno = 7 (0x7), region = 86 }
  0x57   :  { %242 = vsyncpa [#allocation3], 1 }
  0x58   :  { %244 = vsyncpa [#allocation3 + $0x1], 1 }
  0x59   :  { %245 = vsyncpa [#allocation4], 1 }
  0x5a   :  { %247 = vsyncpa [#allocation4 + $0x1], 1 }
  0x5b   :  { %248 = vsyncpa [#allocation7], 1 }
  0x5c   :  { %250 = vsyncpa [#allocation7 + $0x1], 1 }

</bundles_post_ra>
